<compile_context>
chip_gen: v7x
topology: tpu7x:2x2x1
jax: 0.10.0
libtpu: 0.0.40
codegen_flags: <defaults>
</compile_context>

<pallas_src>
import functools

import jax
import jax.numpy as jnp
import numpy as np
from jax import lax
from jax.experimental import pallas as pl
from jax.experimental.pallas import tpu as pltpu


def _mixpool_kernel(w_ref, x_ref, o_ref, *, kk, inv_area):
    """One (Nb, kk, PP, Ct) input block -> one (Nb, PP, Ct) mixed-pool block.

    w_ref : SMEM (2,) f32 -- sigmoid(weight) = [w_avg, w_max] (scalar prefetch)
    x_ref : VMEM (Nb, kk, PP, Ct) -- kk = kh*kw window elements (major axis),
            PP = pool_size**2 on sublanes, channels on lanes.
    o_ref : VMEM (Nb, PP, Ct) -- lane-dense (channels-last) output block.
    """
    x0 = x_ref[:, 0].astype(jnp.float32)          # (Nb, PP, Ct)
    acc_s = x0
    acc_m = x0
    if kk <= 64:
        # Fully unrolled: pure VPU elementwise add/max, short live ranges
        # (only the two accumulators plus the current slice are live).
        for r in range(1, kk):
            v = x_ref[:, r].astype(jnp.float32)
            acc_s = acc_s + v
            acc_m = jnp.maximum(acc_m, v)
    else:
        # Large windows: keep trace size bounded with an in-kernel loop;
        # dynamic index is on a major (non-tiled) dim, still pure VPU.
        def body(r, carry):
            s, m = carry
            v = x_ref[:, r].astype(jnp.float32)
            return s + v, jnp.maximum(m, v)

        acc_s, acc_m = lax.fori_loop(1, kk, body, (acc_s, acc_m))

    w_avg = w_ref[0] * inv_area                   # fold 1/(kh*kw) into the scalar
    w_max = w_ref[1]
    o_ref[...] = (acc_s * w_avg + acc_m * w_max).astype(o_ref.dtype)


def _choose_tiles(N, C, kk, PP, itemsize, target_bytes):
    """Pick (batch tile, channel tile) so one input block is ~a few MiB."""
    ct = C
    if C % 128 == 0:
        # Shrink the channel tile (keeping it a 128-multiple divisor of C)
        # until a single-sample block fits the target.
        while (ct > 128 and ct % 2 == 0 and (ct // 2) % 128 == 0
               and kk * PP * ct * itemsize > target_bytes):
            ct //= 2
    per_sample = kk * PP * ct * itemsize
    nb = 1
    for d in range(N, 0, -1):                     # largest divisor of N that fits
        if N % d == 0 and d * per_sample <= target_bytes:
            nb = d
            break
    return nb, ct


def mixpool(x, weight, pool_size, *, target_block_bytes=4 * 1024 * 1024):
    """MixPool forward.  x: (N, C, H, W), weight: (2,) pre-sigmoid mix weights."""
    N, C, H, W = x.shape
    P = int(pool_size)
    # Adaptive pooling with H % P == 0 and W % P == 0 degenerates to uniform
    # non-overlapping windows, which is what this kernel implements.
    assert H % P == 0 and W % P == 0, "only uniform-window adaptive pooling supported"
    # TODO(synk): non-divisible adaptive pooling (uneven PyTorch window sizes) not implemented.
    kh, kw = H // P, W // P
    kk, PP = kh * kw, P * P

    # Channels-last relayout (wrapper-side layout plumbing):
    #   (N, C, H, W) -> (N, kh*kw, P*P, C)
    # x_rel[n, di*kw+dj, i*P+j, c] == x[n, c, i*kh+di, j*kw+dj]
    xr = x.reshape(N, C, P, kh, P, kw)
    xr = xr.transpose(0, 3, 5, 2, 4, 1).reshape(N, kk, PP, C)

    nb, ct = _choose_tiles(N, C, kk, PP, xr.dtype.itemsize, target_block_bytes)

    # Sigmoid the 2-element weight in the wrapper; pass as SMEM scalars.
    w_sig = jax.nn.sigmoid(weight.astype(jnp.float32)).reshape(2)

    kernel = functools.partial(_mixpool_kernel, kk=kk, inv_area=1.0 / float(kk))

    out = pl.pallas_call(
        kernel,
        out_shape=jax.ShapeDtypeStruct((N, PP, C), x.dtype),
        grid_spec=pltpu.PrefetchScalarGridSpec(
            num_scalar_prefetch=1,                 # sigmoid(weight) -> SMEM
            grid=(N // nb, C // ct),
            in_specs=[
                pl.BlockSpec((nb, kk, PP, ct), lambda n, c, w: (n, 0, 0, c)),
            ],
            out_specs=pl.BlockSpec((nb, PP, ct), lambda n, c, w: (n, 0, c)),
        ),
        compiler_params=pltpu.CompilerParams(
            dimension_semantics=("parallel", "parallel"),
            vmem_limit_bytes=32 * 1024 * 1024,
        ),
    )(w_sig, xr)

    # (N, P*P, C) -> (N, C, P*P) -> (N, C*P*P): matches pooled NCHW .flatten(1).
    return out.transpose(0, 2, 1).reshape(N, C * PP)


if __name__ == "__main__":
    key = jax.random.PRNGKey(0)
    N, C, H, W = 2, 4, 16, 16
    pool_size = 2

    x = jax.random.normal(key, (N, C, H, W), dtype=jnp.float32)
    # Deterministic param init: both the learnable Parameter and the buffer in
    # the PyTorch module are initialized to ones(2).
    weight = jnp.ones((2,), dtype=jnp.float32)

    out = jax.block_until_ready(mixpool(x, weight, pool_size))

    # Pure-JAX reference (exact adaptive pooling for divisible sizes).
    kh, kw = H // pool_size, W // pool_size
    xr = x.reshape(N, C, pool_size, kh, pool_size, kw)
    avg = xr.mean(axis=(3, 5))
    mx = xr.max(axis=(3, 5))
    s = jax.nn.sigmoid(weight)
    ref = (avg * s[0] + mx * s[1]).reshape(N, -1)

    assert out.shape == (N, C * pool_size * pool_size)
    np.testing.assert_allclose(np.asarray(out), np.asarray(ref), rtol=1e-5, atol=1e-5)
    print("KERNEL_OK")
</pallas_src>

<mosaic_0001>
module attributes {stable_mosaic.version = 11 : i64} {
  func.func @_mixpool_kernel(%arg0: i32, %arg1: i32, %arg2: memref<2xf32, #tpu.memory_space<smem>>, %arg3: memref<2x64x4x4xf32, #tpu.memory_space<vmem>>, %arg4: memref<2x4x4xf32, #tpu.memory_space<vmem>>) attributes {dimension_semantics = [#tpu.dimension_semantics<parallel>, #tpu.dimension_semantics<parallel>], iteration_bounds = array<i64: 1, 1>, scalar_prefetch = 1 : i64, scratch_operands = 0 : i64, tpu.core_type = #tpu.core_type<tc>, window_params = [{transform_indices = @transform_0, window_bounds = array<i64: 2, 64, 4, 4>}, {transform_indices = @transform_1, window_bounds = array<i64: 2, 4, 4>}]} {
    %c0 = arith.constant 0 : index
    %c0_0 = arith.constant 0 : index
    %c0_1 = arith.constant 0 : index
    %c0_2 = arith.constant 0 : index
    %0 = vector.load %arg3[%c0, %c0_0, %c0_1, %c0_2] : memref<2x64x4x4xf32, #tpu.memory_space<vmem>>, vector<2x1x4x4xf32>
    %1 = vector.shape_cast %0 : vector<2x1x4x4xf32> to vector<2x4x4xf32>
    %c0_3 = arith.constant 0 : index
    %c1 = arith.constant 1 : index
    %c0_4 = arith.constant 0 : index
    %c0_5 = arith.constant 0 : index
    %2 = vector.load %arg3[%c0_3, %c1, %c0_4, %c0_5] : memref<2x64x4x4xf32, #tpu.memory_space<vmem>>, vector<2x1x4x4xf32>
    %3 = vector.shape_cast %2 : vector<2x1x4x4xf32> to vector<2x4x4xf32>
    %4 = arith.addf %1, %3 : vector<2x4x4xf32>
    %5 = arith.maximumf %1, %3 : vector<2x4x4xf32>
    %c0_6 = arith.constant 0 : index
    %c2 = arith.constant 2 : index
    %c0_7 = arith.constant 0 : index
    %c0_8 = arith.constant 0 : index
    %6 = vector.load %arg3[%c0_6, %c2, %c0_7, %c0_8] : memref<2x64x4x4xf32, #tpu.memory_space<vmem>>, vector<2x1x4x4xf32>
    %7 = vector.shape_cast %6 : vector<2x1x4x4xf32> to vector<2x4x4xf32>
    %8 = arith.addf %4, %7 : vector<2x4x4xf32>
    %9 = arith.maximumf %5, %7 : vector<2x4x4xf32>
    %c0_9 = arith.constant 0 : index
    %c3 = arith.constant 3 : index
    %c0_10 = arith.constant 0 : index
    %c0_11 = arith.constant 0 : index
    %10 = vector.load %arg3[%c0_9, %c3, %c0_10, %c0_11] : memref<2x64x4x4xf32, #tpu.memory_space<vmem>>, vector<2x1x4x4xf32>
    %11 = vector.shape_cast %10 : vector<2x1x4x4xf32> to vector<2x4x4xf32>
    %12 = arith.addf %8, %11 : vector<2x4x4xf32>
    %13 = arith.maximumf %9, %11 : vector<2x4x4xf32>
    %c0_12 = arith.constant 0 : index
    %c4 = arith.constant 4 : index
    %c0_13 = arith.constant 0 : index
    %c0_14 = arith.constant 0 : index
    %14 = vector.load %arg3[%c0_12, %c4, %c0_13, %c0_14] : memref<2x64x4x4xf32, #tpu.memory_space<vmem>>, vector<2x1x4x4xf32>
    %15 = vector.shape_cast %14 : vector<2x1x4x4xf32> to vector<2x4x4xf32>
    %16 = arith.addf %12, %15 : vector<2x4x4xf32>
    %17 = arith.maximumf %13, %15 : vector<2x4x4xf32>
    %c0_15 = arith.constant 0 : index
    %c5 = arith.constant 5 : index
    %c0_16 = arith.constant 0 : index
    %c0_17 = arith.constant 0 : index
    %18 = vector.load %arg3[%c0_15, %c5, %c0_16, %c0_17] : memref<2x64x4x4xf32, #tpu.memory_space<vmem>>, vector<2x1x4x4xf32>
    %19 = vector.shape_cast %18 : vector<2x1x4x4xf32> to vector<2x4x4xf32>
    %20 = arith.addf %16, %19 : vector<2x4x4xf32>
    %21 = arith.maximumf %17, %19 : vector<2x4x4xf32>
    %c0_18 = arith.constant 0 : index
    %c6 = arith.constant 6 : index
    %c0_19 = arith.constant 0 : index
    %c0_20 = arith.constant 0 : index
    %22 = vector.load %arg3[%c0_18, %c6, %c0_19, %c0_20] : memref<2x64x4x4xf32, #tpu.memory_space<vmem>>, vector<2x1x4x4xf32>
    %23 = vector.shape_cast %22 : vector<2x1x4x4xf32> to vector<2x4x4xf32>
    %24 = arith.addf %20, %23 : vector<2x4x4xf32>
    %25 = arith.maximumf %21, %23 : vector<2x4x4xf32>
    %c0_21 = arith.constant 0 : index
    %c7 = arith.constant 7 : index
    %c0_22 = arith.constant 0 : index
    %c0_23 = arith.constant 0 : index
    %26 = vector.load %arg3[%c0_21, %c7, %c0_22, %c0_23] : memref<2x64x4x4xf32, #tpu.memory_space<vmem>>, vector<2x1x4x4xf32>
    %27 = vector.shape_cast %26 : vector<2x1x4x4xf32> to vector<2x4x4xf32>
    %28 = arith.addf %24, %27 : vector<2x4x4xf32>
    %29 = arith.maximumf %25, %27 : vector<2x4x4xf32>
    %c0_24 = arith.constant 0 : index
    %c8 = arith.constant 8 : index
    %c0_25 = arith.constant 0 : index
    %c0_26 = arith.constant 0 : index
    %30 = vector.load %arg3[%c0_24, %c8, %c0_25, %c0_26] : memref<2x64x4x4xf32, #tpu.memory_space<vmem>>, vector<2x1x4x4xf32>
    %31 = vector.shape_cast %30 : vector<2x1x4x4xf32> to vector<2x4x4xf32>
    %32 = arith.addf %28, %31 : vector<2x4x4xf32>
    %33 = arith.maximumf %29, %31 : vector<2x4x4xf32>
    %c0_27 = arith.constant 0 : index
    %c9 = arith.constant 9 : index
    %c0_28 = arith.constant 0 : index
    %c0_29 = arith.constant 0 : index
    %34 = vector.load %arg3[%c0_27, %c9, %c0_28, %c0_29] : memref<2x64x4x4xf32, #tpu.memory_space<vmem>>, vector<2x1x4x4xf32>
    %35 = vector.shape_cast %34 : vector<2x1x4x4xf32> to vector<2x4x4xf32>
    %36 = arith.addf %32, %35 : vector<2x4x4xf32>
    %37 = arith.maximumf %33, %35 : vector<2x4x4xf32>
    %c0_30 = arith.constant 0 : index
    %c10 = arith.constant 10 : index
    %c0_31 = arith.constant 0 : index
    %c0_32 = arith.constant 0 : index
    %38 = vector.load %arg3[%c0_30, %c10, %c0_31, %c0_32] : memref<2x64x4x4xf32, #tpu.memory_space<vmem>>, vector<2x1x4x4xf32>
    %39 = vector.shape_cast %38 : vector<2x1x4x4xf32> to vector<2x4x4xf32>
    %40 = arith.addf %36, %39 : vector<2x4x4xf32>
    %41 = arith.maximumf %37, %39 : vector<2x4x4xf32>
    %c0_33 = arith.constant 0 : index
    %c11 = arith.constant 11 : index
    %c0_34 = arith.constant 0 : index
    %c0_35 = arith.constant 0 : index
    %42 = vector.load %arg3[%c0_33, %c11, %c0_34, %c0_35] : memref<2x64x4x4xf32, #tpu.memory_space<vmem>>, vector<2x1x4x4xf32>
    %43 = vector.shape_cast %42 : vector<2x1x4x4xf32> to vector<2x4x4xf32>
    %44 = arith.addf %40, %43 : vector<2x4x4xf32>
    %45 = arith.maximumf %41, %43 : vector<2x4x4xf32>
    %c0_36 = arith.constant 0 : index
    %c12 = arith.constant 12 : index
    %c0_37 = arith.constant 0 : index
    %c0_38 = arith.constant 0 : index
    %46 = vector.load %arg3[%c0_36, %c12, %c0_37, %c0_38] : memref<2x64x4x4xf32, #tpu.memory_space<vmem>>, vector<2x1x4x4xf32>
    %47 = vector.shape_cast %46 : vector<2x1x4x4xf32> to vector<2x4x4xf32>
    %48 = arith.addf %44, %47 : vector<2x4x4xf32>
    %49 = arith.maximumf %45, %47 : vector<2x4x4xf32>
    %c0_39 = arith.constant 0 : index
    %c13 = arith.constant 13 : index
    %c0_40 = arith.constant 0 : index
    %c0_41 = arith.constant 0 : index
    %50 = vector.load %arg3[%c0_39, %c13, %c0_40, %c0_41] : memref<2x64x4x4xf32, #tpu.memory_space<vmem>>, vector<2x1x4x4xf32>
    %51 = vector.shape_cast %50 : vector<2x1x4x4xf32> to vector<2x4x4xf32>
    %52 = arith.addf %48, %51 : vector<2x4x4xf32>
    %53 = arith.maximumf %49, %51 : vector<2x4x4xf32>
    %c0_42 = arith.constant 0 : index
    %c14 = arith.constant 14 : index
    %c0_43 = arith.constant 0 : index
    %c0_44 = arith.constant 0 : index
    %54 = vector.load %arg3[%c0_42, %c14, %c0_43, %c0_44] : memref<2x64x4x4xf32, #tpu.memory_space<vmem>>, vector<2x1x4x4xf32>
    %55 = vector.shape_cast %54 : vector<2x1x4x4xf32> to vector<2x4x4xf32>
    %56 = arith.addf %52, %55 : vector<2x4x4xf32>
    %57 = arith.maximumf %53, %55 : vector<2x4x4xf32>
    %c0_45 = arith.constant 0 : index
    %c15 = arith.constant 15 : index
    %c0_46 = arith.constant 0 : index
    %c0_47 = arith.constant 0 : index
    %58 = vector.load %arg3[%c0_45, %c15, %c0_46, %c0_47] : memref<2x64x4x4xf32, #tpu.memory_space<vmem>>, vector<2x1x4x4xf32>
    %59 = vector.shape_cast %58 : vector<2x1x4x4xf32> to vector<2x4x4xf32>
    %60 = arith.addf %56, %59 : vector<2x4x4xf32>
    %61 = arith.maximumf %57, %59 : vector<2x4x4xf32>
    %c0_48 = arith.constant 0 : index
    %c16 = arith.constant 16 : index
    %c0_49 = arith.constant 0 : index
    %c0_50 = arith.constant 0 : index
    %62 = vector.load %arg3[%c0_48, %c16, %c0_49, %c0_50] : memref<2x64x4x4xf32, #tpu.memory_space<vmem>>, vector<2x1x4x4xf32>
    %63 = vector.shape_cast %62 : vector<2x1x4x4xf32> to vector<2x4x4xf32>
    %64 = arith.addf %60, %63 : vector<2x4x4xf32>
    %65 = arith.maximumf %61, %63 : vector<2x4x4xf32>
    %c0_51 = arith.constant 0 : index
    %c17 = arith.constant 17 : index
    %c0_52 = arith.constant 0 : index
    %c0_53 = arith.constant 0 : index
    %66 = vector.load %arg3[%c0_51, %c17, %c0_52, %c0_53] : memref<2x64x4x4xf32, #tpu.memory_space<vmem>>, vector<2x1x4x4xf32>
    %67 = vector.shape_cast %66 : vector<2x1x4x4xf32> to vector<2x4x4xf32>
    %68 = arith.addf %64, %67 : vector<2x4x4xf32>
    %69 = arith.maximumf %65, %67 : vector<2x4x4xf32>
    %c0_54 = arith.constant 0 : index
    %c18 = arith.constant 18 : index
    %c0_55 = arith.constant 0 : index
    %c0_56 = arith.constant 0 : index
    %70 = vector.load %arg3[%c0_54, %c18, %c0_55, %c0_56] : memref<2x64x4x4xf32, #tpu.memory_space<vmem>>, vector<2x1x4x4xf32>
    %71 = vector.shape_cast %70 : vector<2x1x4x4xf32> to vector<2x4x4xf32>
    %72 = arith.addf %68, %71 : vector<2x4x4xf32>
    %73 = arith.maximumf %69, %71 : vector<2x4x4xf32>
    %c0_57 = arith.constant 0 : index
    %c19 = arith.constant 19 : index
    %c0_58 = arith.constant 0 : index
    %c0_59 = arith.constant 0 : index
    %74 = vector.load %arg3[%c0_57, %c19, %c0_58, %c0_59] : memref<2x64x4x4xf32, #tpu.memory_space<vmem>>, vector<2x1x4x4xf32>
    %75 = vector.shape_cast %74 : vector<2x1x4x4xf32> to vector<2x4x4xf32>
    %76 = arith.addf %72, %75 : vector<2x4x4xf32>
    %77 = arith.maximumf %73, %75 : vector<2x4x4xf32>
    %c0_60 = arith.constant 0 : index
    %c20 = arith.constant 20 : index
    %c0_61 = arith.constant 0 : index
    %c0_62 = arith.constant 0 : index
    %78 = vector.load %arg3[%c0_60, %c20, %c0_61, %c0_62] : memref<2x64x4x4xf32, #tpu.memory_space<vmem>>, vector<2x1x4x4xf32>
    %79 = vector.shape_cast %78 : vector<2x1x4x4xf32> to vector<2x4x4xf32>
    %80 = arith.addf %76, %79 : vector<2x4x4xf32>
    %81 = arith.maximumf %77, %79 : vector<2x4x4xf32>
    %c0_63 = arith.constant 0 : index
    %c21 = arith.constant 21 : index
    %c0_64 = arith.constant 0 : index
    %c0_65 = arith.constant 0 : index
    %82 = vector.load %arg3[%c0_63, %c21, %c0_64, %c0_65] : memref<2x64x4x4xf32, #tpu.memory_space<vmem>>, vector<2x1x4x4xf32>
    %83 = vector.shape_cast %82 : vector<2x1x4x4xf32> to vector<2x4x4xf32>
    %84 = arith.addf %80, %83 : vector<2x4x4xf32>
    %85 = arith.maximumf %81, %83 : vector<2x4x4xf32>
    %c0_66 = arith.constant 0 : index
    %c22 = arith.constant 22 : index
    %c0_67 = arith.constant 0 : index
    %c0_68 = arith.constant 0 : index
    %86 = vector.load %arg3[%c0_66, %c22, %c0_67, %c0_68] : memref<2x64x4x4xf32, #tpu.memory_space<vmem>>, vector<2x1x4x4xf32>
    %87 = vector.shape_cast %86 : vector<2x1x4x4xf32> to vector<2x4x4xf32>
    %88 = arith.addf %84, %87 : vector<2x4x4xf32>
    %89 = arith.maximumf %85, %87 : vector<2x4x4xf32>
    %c0_69 = arith.constant 0 : index
    %c23 = arith.constant 23 : index
    %c0_70 = arith.constant 0 : index
    %c0_71 = arith.constant 0 : index
    %90 = vector.load %arg3[%c0_69, %c23, %c0_70, %c0_71] : memref<2x64x4x4xf32, #tpu.memory_space<vmem>>, vector<2x1x4x4xf32>
    %91 = vector.shape_cast %90 : vector<2x1x4x4xf32> to vector<2x4x4xf32>
    %92 = arith.addf %88, %91 : vector<2x4x4xf32>
    %93 = arith.maximumf %89, %91 : vector<2x4x4xf32>
    %c0_72 = arith.constant 0 : index
    %c24 = arith.constant 24 : index
    %c0_73 = arith.constant 0 : index
    %c0_74 = arith.constant 0 : index
    %94 = vector.load %arg3[%c0_72, %c24, %c0_73, %c0_74] : memref<2x64x4x4xf32, #tpu.memory_space<vmem>>, vector<2x1x4x4xf32>
    %95 = vector.shape_cast %94 : vector<2x1x4x4xf32> to vector<2x4x4xf32>
    %96 = arith.addf %92, %95 : vector<2x4x4xf32>
    %97 = arith.maximumf %93, %95 : vector<2x4x4xf32>
    %c0_75 = arith.constant 0 : index
    %c25 = arith.constant 25 : index
    %c0_76 = arith.constant 0 : index
    %c0_77 = arith.constant 0 : index
    %98 = vector.load %arg3[%c0_75, %c25, %c0_76, %c0_77] : memref<2x64x4x4xf32, #tpu.memory_space<vmem>>, vector<2x1x4x4xf32>
    %99 = vector.shape_cast %98 : vector<2x1x4x4xf32> to vector<2x4x4xf32>
    %100 = arith.addf %96, %99 : vector<2x4x4xf32>
    %101 = arith.maximumf %97, %99 : vector<2x4x4xf32>
    %c0_78 = arith.constant 0 : index
    %c26 = arith.constant 26 : index
    %c0_79 = arith.constant 0 : index
    %c0_80 = arith.constant 0 : index
    %102 = vector.load %arg3[%c0_78, %c26, %c0_79, %c0_80] : memref<2x64x4x4xf32, #tpu.memory_space<vmem>>, vector<2x1x4x4xf32>
    %103 = vector.shape_cast %102 : vector<2x1x4x4xf32> to vector<2x4x4xf32>
    %104 = arith.addf %100, %103 : vector<2x4x4xf32>
    %105 = arith.maximumf %101, %103 : vector<2x4x4xf32>
    %c0_81 = arith.constant 0 : index
    %c27 = arith.constant 27 : index
    %c0_82 = arith.constant 0 : index
    %c0_83 = arith.constant 0 : index
    %106 = vector.load %arg3[%c0_81, %c27, %c0_82, %c0_83] : memref<2x64x4x4xf32, #tpu.memory_space<vmem>>, vector<2x1x4x4xf32>
    %107 = vector.shape_cast %106 : vector<2x1x4x4xf32> to vector<2x4x4xf32>
    %108 = arith.addf %104, %107 : vector<2x4x4xf32>
    %109 = arith.maximumf %105, %107 : vector<2x4x4xf32>
    %c0_84 = arith.constant 0 : index
    %c28 = arith.constant 28 : index
    %c0_85 = arith.constant 0 : index
    %c0_86 = arith.constant 0 : index
    %110 = vector.load %arg3[%c0_84, %c28, %c0_85, %c0_86] : memref<2x64x4x4xf32, #tpu.memory_space<vmem>>, vector<2x1x4x4xf32>
    %111 = vector.shape_cast %110 : vector<2x1x4x4xf32> to vector<2x4x4xf32>
    %112 = arith.addf %108, %111 : vector<2x4x4xf32>
    %113 = arith.maximumf %109, %111 : vector<2x4x4xf32>
    %c0_87 = arith.constant 0 : index
    %c29 = arith.constant 29 : index
    %c0_88 = arith.constant 0 : index
    %c0_89 = arith.constant 0 : index
    %114 = vector.load %arg3[%c0_87, %c29, %c0_88, %c0_89] : memref<2x64x4x4xf32, #tpu.memory_space<vmem>>, vector<2x1x4x4xf32>
    %115 = vector.shape_cast %114 : vector<2x1x4x4xf32> to vector<2x4x4xf32>
    %116 = arith.addf %112, %115 : vector<2x4x4xf32>
    %117 = arith.maximumf %113, %115 : vector<2x4x4xf32>
    %c0_90 = arith.constant 0 : index
    %c30 = arith.constant 30 : index
    %c0_91 = arith.constant 0 : index
    %c0_92 = arith.constant 0 : index
    %118 = vector.load %arg3[%c0_90, %c30, %c0_91, %c0_92] : memref<2x64x4x4xf32, #tpu.memory_space<vmem>>, vector<2x1x4x4xf32>
    %119 = vector.shape_cast %118 : vector<2x1x4x4xf32> to vector<2x4x4xf32>
    %120 = arith.addf %116, %119 : vector<2x4x4xf32>
    %121 = arith.maximumf %117, %119 : vector<2x4x4xf32>
    %c0_93 = arith.constant 0 : index
    %c31 = arith.constant 31 : index
    %c0_94 = arith.constant 0 : index
    %c0_95 = arith.constant 0 : index
    %122 = vector.load %arg3[%c0_93, %c31, %c0_94, %c0_95] : memref<2x64x4x4xf32, #tpu.memory_space<vmem>>, vector<2x1x4x4xf32>
    %123 = vector.shape_cast %122 : vector<2x1x4x4xf32> to vector<2x4x4xf32>
    %124 = arith.addf %120, %123 : vector<2x4x4xf32>
    %125 = arith.maximumf %121, %123 : vector<2x4x4xf32>
    %c0_96 = arith.constant 0 : index
    %c32 = arith.constant 32 : index
    %c0_97 = arith.constant 0 : index
    %c0_98 = arith.constant 0 : index
    %126 = vector.load %arg3[%c0_96, %c32, %c0_97, %c0_98] : memref<2x64x4x4xf32, #tpu.memory_space<vmem>>, vector<2x1x4x4xf32>
    %127 = vector.shape_cast %126 : vector<2x1x4x4xf32> to vector<2x4x4xf32>
    %128 = arith.addf %124, %127 : vector<2x4x4xf32>
    %129 = arith.maximumf %125, %127 : vector<2x4x4xf32>
    %c0_99 = arith.constant 0 : index
    %c33 = arith.constant 33 : index
    %c0_100 = arith.constant 0 : index
    %c0_101 = arith.constant 0 : index
    %130 = vector.load %arg3[%c0_99, %c33, %c0_100, %c0_101] : memref<2x64x4x4xf32, #tpu.memory_space<vmem>>, vector<2x1x4x4xf32>
    %131 = vector.shape_cast %130 : vector<2x1x4x4xf32> to vector<2x4x4xf32>
    %132 = arith.addf %128, %131 : vector<2x4x4xf32>
    %133 = arith.maximumf %129, %131 : vector<2x4x4xf32>
    %c0_102 = arith.constant 0 : index
    %c34 = arith.constant 34 : index
    %c0_103 = arith.constant 0 : index
    %c0_104 = arith.constant 0 : index
    %134 = vector.load %arg3[%c0_102, %c34, %c0_103, %c0_104] : memref<2x64x4x4xf32, #tpu.memory_space<vmem>>, vector<2x1x4x4xf32>
    %135 = vector.shape_cast %134 : vector<2x1x4x4xf32> to vector<2x4x4xf32>
    %136 = arith.addf %132, %135 : vector<2x4x4xf32>
    %137 = arith.maximumf %133, %135 : vector<2x4x4xf32>
    %c0_105 = arith.constant 0 : index
    %c35 = arith.constant 35 : index
    %c0_106 = arith.constant 0 : index
    %c0_107 = arith.constant 0 : index
    %138 = vector.load %arg3[%c0_105, %c35, %c0_106, %c0_107] : memref<2x64x4x4xf32, #tpu.memory_space<vmem>>, vector<2x1x4x4xf32>
    %139 = vector.shape_cast %138 : vector<2x1x4x4xf32> to vector<2x4x4xf32>
    %140 = arith.addf %136, %139 : vector<2x4x4xf32>
    %141 = arith.maximumf %137, %139 : vector<2x4x4xf32>
    %c0_108 = arith.constant 0 : index
    %c36 = arith.constant 36 : index
    %c0_109 = arith.constant 0 : index
    %c0_110 = arith.constant 0 : index
    %142 = vector.load %arg3[%c0_108, %c36, %c0_109, %c0_110] : memref<2x64x4x4xf32, #tpu.memory_space<vmem>>, vector<2x1x4x4xf32>
    %143 = vector.shape_cast %142 : vector<2x1x4x4xf32> to vector<2x4x4xf32>
    %144 = arith.addf %140, %143 : vector<2x4x4xf32>
    %145 = arith.maximumf %141, %143 : vector<2x4x4xf32>
    %c0_111 = arith.constant 0 : index
    %c37 = arith.constant 37 : index
    %c0_112 = arith.constant 0 : index
    %c0_113 = arith.constant 0 : index
    %146 = vector.load %arg3[%c0_111, %c37, %c0_112, %c0_113] : memref<2x64x4x4xf32, #tpu.memory_space<vmem>>, vector<2x1x4x4xf32>
    %147 = vector.shape_cast %146 : vector<2x1x4x4xf32> to vector<2x4x4xf32>
    %148 = arith.addf %144, %147 : vector<2x4x4xf32>
    %149 = arith.maximumf %145, %147 : vector<2x4x4xf32>
    %c0_114 = arith.constant 0 : index
    %c38 = arith.constant 38 : index
    %c0_115 = arith.constant 0 : index
    %c0_116 = arith.constant 0 : index
    %150 = vector.load %arg3[%c0_114, %c38, %c0_115, %c0_116] : memref<2x64x4x4xf32, #tpu.memory_space<vmem>>, vector<2x1x4x4xf32>
    %151 = vector.shape_cast %150 : vector<2x1x4x4xf32> to vector<2x4x4xf32>
    %152 = arith.addf %148, %151 : vector<2x4x4xf32>
    %153 = arith.maximumf %149, %151 : vector<2x4x4xf32>
    %c0_117 = arith.constant 0 : index
    %c39 = arith.constant 39 : index
    %c0_118 = arith.constant 0 : index
    %c0_119 = arith.constant 0 : index
    %154 = vector.load %arg3[%c0_117, %c39, %c0_118, %c0_119] : memref<2x64x4x4xf32, #tpu.memory_space<vmem>>, vector<2x1x4x4xf32>
    %155 = vector.shape_cast %154 : vector<2x1x4x4xf32> to vector<2x4x4xf32>
    %156 = arith.addf %152, %155 : vector<2x4x4xf32>
    %157 = arith.maximumf %153, %155 : vector<2x4x4xf32>
    %c0_120 = arith.constant 0 : index
    %c40 = arith.constant 40 : index
    %c0_121 = arith.constant 0 : index
    %c0_122 = arith.constant 0 : index
    %158 = vector.load %arg3[%c0_120, %c40, %c0_121, %c0_122] : memref<2x64x4x4xf32, #tpu.memory_space<vmem>>, vector<2x1x4x4xf32>
    %159 = vector.shape_cast %158 : vector<2x1x4x4xf32> to vector<2x4x4xf32>
    %160 = arith.addf %156, %159 : vector<2x4x4xf32>
    %161 = arith.maximumf %157, %159 : vector<2x4x4xf32>
    %c0_123 = arith.constant 0 : index
    %c41 = arith.constant 41 : index
    %c0_124 = arith.constant 0 : index
    %c0_125 = arith.constant 0 : index
    %162 = vector.load %arg3[%c0_123, %c41, %c0_124, %c0_125] : memref<2x64x4x4xf32, #tpu.memory_space<vmem>>, vector<2x1x4x4xf32>
    %163 = vector.shape_cast %162 : vector<2x1x4x4xf32> to vector<2x4x4xf32>
    %164 = arith.addf %160, %163 : vector<2x4x4xf32>
    %165 = arith.maximumf %161, %163 : vector<2x4x4xf32>
    %c0_126 = arith.constant 0 : index
    %c42 = arith.constant 42 : index
    %c0_127 = arith.constant 0 : index
    %c0_128 = arith.constant 0 : index
    %166 = vector.load %arg3[%c0_126, %c42, %c0_127, %c0_128] : memref<2x64x4x4xf32, #tpu.memory_space<vmem>>, vector<2x1x4x4xf32>
    %167 = vector.shape_cast %166 : vector<2x1x4x4xf32> to vector<2x4x4xf32>
    %168 = arith.addf %164, %167 : vector<2x4x4xf32>
    %169 = arith.maximumf %165, %167 : vector<2x4x4xf32>
    %c0_129 = arith.constant 0 : index
    %c43 = arith.constant 43 : index
    %c0_130 = arith.constant 0 : index
    %c0_131 = arith.constant 0 : index
    %170 = vector.load %arg3[%c0_129, %c43, %c0_130, %c0_131] : memref<2x64x4x4xf32, #tpu.memory_space<vmem>>, vector<2x1x4x4xf32>
    %171 = vector.shape_cast %170 : vector<2x1x4x4xf32> to vector<2x4x4xf32>
    %172 = arith.addf %168, %171 : vector<2x4x4xf32>
    %173 = arith.maximumf %169, %171 : vector<2x4x4xf32>
    %c0_132 = arith.constant 0 : index
    %c44 = arith.constant 44 : index
    %c0_133 = arith.constant 0 : index
    %c0_134 = arith.constant 0 : index
    %174 = vector.load %arg3[%c0_132, %c44, %c0_133, %c0_134] : memref<2x64x4x4xf32, #tpu.memory_space<vmem>>, vector<2x1x4x4xf32>
    %175 = vector.shape_cast %174 : vector<2x1x4x4xf32> to vector<2x4x4xf32>
    %176 = arith.addf %172, %175 : vector<2x4x4xf32>
    %177 = arith.maximumf %173, %175 : vector<2x4x4xf32>
    %c0_135 = arith.constant 0 : index
    %c45 = arith.constant 45 : index
    %c0_136 = arith.constant 0 : index
    %c0_137 = arith.constant 0 : index
    %178 = vector.load %arg3[%c0_135, %c45, %c0_136, %c0_137] : memref<2x64x4x4xf32, #tpu.memory_space<vmem>>, vector<2x1x4x4xf32>
    %179 = vector.shape_cast %178 : vector<2x1x4x4xf32> to vector<2x4x4xf32>
    %180 = arith.addf %176, %179 : vector<2x4x4xf32>
    %181 = arith.maximumf %177, %179 : vector<2x4x4xf32>
    %c0_138 = arith.constant 0 : index
    %c46 = arith.constant 46 : index
    %c0_139 = arith.constant 0 : index
    %c0_140 = arith.constant 0 : index
    %182 = vector.load %arg3[%c0_138, %c46, %c0_139, %c0_140] : memref<2x64x4x4xf32, #tpu.memory_space<vmem>>, vector<2x1x4x4xf32>
    %183 = vector.shape_cast %182 : vector<2x1x4x4xf32> to vector<2x4x4xf32>
    %184 = arith.addf %180, %183 : vector<2x4x4xf32>
    %185 = arith.maximumf %181, %183 : vector<2x4x4xf32>
    %c0_141 = arith.constant 0 : index
    %c47 = arith.constant 47 : index
    %c0_142 = arith.constant 0 : index
    %c0_143 = arith.constant 0 : index
    %186 = vector.load %arg3[%c0_141, %c47, %c0_142, %c0_143] : memref<2x64x4x4xf32, #tpu.memory_space<vmem>>, vector<2x1x4x4xf32>
    %187 = vector.shape_cast %186 : vector<2x1x4x4xf32> to vector<2x4x4xf32>
    %188 = arith.addf %184, %187 : vector<2x4x4xf32>
    %189 = arith.maximumf %185, %187 : vector<2x4x4xf32>
    %c0_144 = arith.constant 0 : index
    %c48 = arith.constant 48 : index
    %c0_145 = arith.constant 0 : index
    %c0_146 = arith.constant 0 : index
    %190 = vector.load %arg3[%c0_144, %c48, %c0_145, %c0_146] : memref<2x64x4x4xf32, #tpu.memory_space<vmem>>, vector<2x1x4x4xf32>
    %191 = vector.shape_cast %190 : vector<2x1x4x4xf32> to vector<2x4x4xf32>
    %192 = arith.addf %188, %191 : vector<2x4x4xf32>
    %193 = arith.maximumf %189, %191 : vector<2x4x4xf32>
    %c0_147 = arith.constant 0 : index
    %c49 = arith.constant 49 : index
    %c0_148 = arith.constant 0 : index
    %c0_149 = arith.constant 0 : index
    %194 = vector.load %arg3[%c0_147, %c49, %c0_148, %c0_149] : memref<2x64x4x4xf32, #tpu.memory_space<vmem>>, vector<2x1x4x4xf32>
    %195 = vector.shape_cast %194 : vector<2x1x4x4xf32> to vector<2x4x4xf32>
    %196 = arith.addf %192, %195 : vector<2x4x4xf32>
    %197 = arith.maximumf %193, %195 : vector<2x4x4xf32>
    %c0_150 = arith.constant 0 : index
    %c50 = arith.constant 50 : index
    %c0_151 = arith.constant 0 : index
    %c0_152 = arith.constant 0 : index
    %198 = vector.load %arg3[%c0_150, %c50, %c0_151, %c0_152] : memref<2x64x4x4xf32, #tpu.memory_space<vmem>>, vector<2x1x4x4xf32>
    %199 = vector.shape_cast %198 : vector<2x1x4x4xf32> to vector<2x4x4xf32>
    %200 = arith.addf %196, %199 : vector<2x4x4xf32>
    %201 = arith.maximumf %197, %199 : vector<2x4x4xf32>
    %c0_153 = arith.constant 0 : index
    %c51 = arith.constant 51 : index
    %c0_154 = arith.constant 0 : index
    %c0_155 = arith.constant 0 : index
    %202 = vector.load %arg3[%c0_153, %c51, %c0_154, %c0_155] : memref<2x64x4x4xf32, #tpu.memory_space<vmem>>, vector<2x1x4x4xf32>
    %203 = vector.shape_cast %202 : vector<2x1x4x4xf32> to vector<2x4x4xf32>
    %204 = arith.addf %200, %203 : vector<2x4x4xf32>
    %205 = arith.maximumf %201, %203 : vector<2x4x4xf32>
    %c0_156 = arith.constant 0 : index
    %c52 = arith.constant 52 : index
    %c0_157 = arith.constant 0 : index
    %c0_158 = arith.constant 0 : index
    %206 = vector.load %arg3[%c0_156, %c52, %c0_157, %c0_158] : memref<2x64x4x4xf32, #tpu.memory_space<vmem>>, vector<2x1x4x4xf32>
    %207 = vector.shape_cast %206 : vector<2x1x4x4xf32> to vector<2x4x4xf32>
    %208 = arith.addf %204, %207 : vector<2x4x4xf32>
    %209 = arith.maximumf %205, %207 : vector<2x4x4xf32>
    %c0_159 = arith.constant 0 : index
    %c53 = arith.constant 53 : index
    %c0_160 = arith.constant 0 : index
    %c0_161 = arith.constant 0 : index
    %210 = vector.load %arg3[%c0_159, %c53, %c0_160, %c0_161] : memref<2x64x4x4xf32, #tpu.memory_space<vmem>>, vector<2x1x4x4xf32>
    %211 = vector.shape_cast %210 : vector<2x1x4x4xf32> to vector<2x4x4xf32>
    %212 = arith.addf %208, %211 : vector<2x4x4xf32>
    %213 = arith.maximumf %209, %211 : vector<2x4x4xf32>
    %c0_162 = arith.constant 0 : index
    %c54 = arith.constant 54 : index
    %c0_163 = arith.constant 0 : index
    %c0_164 = arith.constant 0 : index
    %214 = vector.load %arg3[%c0_162, %c54, %c0_163, %c0_164] : memref<2x64x4x4xf32, #tpu.memory_space<vmem>>, vector<2x1x4x4xf32>
    %215 = vector.shape_cast %214 : vector<2x1x4x4xf32> to vector<2x4x4xf32>
    %216 = arith.addf %212, %215 : vector<2x4x4xf32>
    %217 = arith.maximumf %213, %215 : vector<2x4x4xf32>
    %c0_165 = arith.constant 0 : index
    %c55 = arith.constant 55 : index
    %c0_166 = arith.constant 0 : index
    %c0_167 = arith.constant 0 : index
    %218 = vector.load %arg3[%c0_165, %c55, %c0_166, %c0_167] : memref<2x64x4x4xf32, #tpu.memory_space<vmem>>, vector<2x1x4x4xf32>
    %219 = vector.shape_cast %218 : vector<2x1x4x4xf32> to vector<2x4x4xf32>
    %220 = arith.addf %216, %219 : vector<2x4x4xf32>
    %221 = arith.maximumf %217, %219 : vector<2x4x4xf32>
    %c0_168 = arith.constant 0 : index
    %c56 = arith.constant 56 : index
    %c0_169 = arith.constant 0 : index
    %c0_170 = arith.constant 0 : index
    %222 = vector.load %arg3[%c0_168, %c56, %c0_169, %c0_170] : memref<2x64x4x4xf32, #tpu.memory_space<vmem>>, vector<2x1x4x4xf32>
    %223 = vector.shape_cast %222 : vector<2x1x4x4xf32> to vector<2x4x4xf32>
    %224 = arith.addf %220, %223 : vector<2x4x4xf32>
    %225 = arith.maximumf %221, %223 : vector<2x4x4xf32>
    %c0_171 = arith.constant 0 : index
    %c57 = arith.constant 57 : index
    %c0_172 = arith.constant 0 : index
    %c0_173 = arith.constant 0 : index
    %226 = vector.load %arg3[%c0_171, %c57, %c0_172, %c0_173] : memref<2x64x4x4xf32, #tpu.memory_space<vmem>>, vector<2x1x4x4xf32>
    %227 = vector.shape_cast %226 : vector<2x1x4x4xf32> to vector<2x4x4xf32>
    %228 = arith.addf %224, %227 : vector<2x4x4xf32>
    %229 = arith.maximumf %225, %227 : vector<2x4x4xf32>
    %c0_174 = arith.constant 0 : index
    %c58 = arith.constant 58 : index
    %c0_175 = arith.constant 0 : index
    %c0_176 = arith.constant 0 : index
    %230 = vector.load %arg3[%c0_174, %c58, %c0_175, %c0_176] : memref<2x64x4x4xf32, #tpu.memory_space<vmem>>, vector<2x1x4x4xf32>
    %231 = vector.shape_cast %230 : vector<2x1x4x4xf32> to vector<2x4x4xf32>
    %232 = arith.addf %228, %231 : vector<2x4x4xf32>
    %233 = arith.maximumf %229, %231 : vector<2x4x4xf32>
    %c0_177 = arith.constant 0 : index
    %c59 = arith.constant 59 : index
    %c0_178 = arith.constant 0 : index
    %c0_179 = arith.constant 0 : index
    %234 = vector.load %arg3[%c0_177, %c59, %c0_178, %c0_179] : memref<2x64x4x4xf32, #tpu.memory_space<vmem>>, vector<2x1x4x4xf32>
    %235 = vector.shape_cast %234 : vector<2x1x4x4xf32> to vector<2x4x4xf32>
    %236 = arith.addf %232, %235 : vector<2x4x4xf32>
    %237 = arith.maximumf %233, %235 : vector<2x4x4xf32>
    %c0_180 = arith.constant 0 : index
    %c60 = arith.constant 60 : index
    %c0_181 = arith.constant 0 : index
    %c0_182 = arith.constant 0 : index
    %238 = vector.load %arg3[%c0_180, %c60, %c0_181, %c0_182] : memref<2x64x4x4xf32, #tpu.memory_space<vmem>>, vector<2x1x4x4xf32>
    %239 = vector.shape_cast %238 : vector<2x1x4x4xf32> to vector<2x4x4xf32>
    %240 = arith.addf %236, %239 : vector<2x4x4xf32>
    %241 = arith.maximumf %237, %239 : vector<2x4x4xf32>
    %c0_183 = arith.constant 0 : index
    %c61 = arith.constant 61 : index
    %c0_184 = arith.constant 0 : index
    %c0_185 = arith.constant 0 : index
    %242 = vector.load %arg3[%c0_183, %c61, %c0_184, %c0_185] : memref<2x64x4x4xf32, #tpu.memory_space<vmem>>, vector<2x1x4x4xf32>
    %243 = vector.shape_cast %242 : vector<2x1x4x4xf32> to vector<2x4x4xf32>
    %244 = arith.addf %240, %243 : vector<2x4x4xf32>
    %245 = arith.maximumf %241, %243 : vector<2x4x4xf32>
    %c0_186 = arith.constant 0 : index
    %c62 = arith.constant 62 : index
    %c0_187 = arith.constant 0 : index
    %c0_188 = arith.constant 0 : index
    %246 = vector.load %arg3[%c0_186, %c62, %c0_187, %c0_188] : memref<2x64x4x4xf32, #tpu.memory_space<vmem>>, vector<2x1x4x4xf32>
    %247 = vector.shape_cast %246 : vector<2x1x4x4xf32> to vector<2x4x4xf32>
    %248 = arith.addf %244, %247 : vector<2x4x4xf32>
    %249 = arith.maximumf %245, %247 : vector<2x4x4xf32>
    %c0_189 = arith.constant 0 : index
    %c63 = arith.constant 63 : index
    %c0_190 = arith.constant 0 : index
    %c0_191 = arith.constant 0 : index
    %250 = vector.load %arg3[%c0_189, %c63, %c0_190, %c0_191] : memref<2x64x4x4xf32, #tpu.memory_space<vmem>>, vector<2x1x4x4xf32>
    %251 = vector.shape_cast %250 : vector<2x1x4x4xf32> to vector<2x4x4xf32>
    %252 = arith.addf %248, %251 : vector<2x4x4xf32>
    %253 = arith.maximumf %249, %251 : vector<2x4x4xf32>
    %c0_192 = arith.constant 0 : index
    %254 = memref.load %arg2[%c0_192] : memref<2xf32, #tpu.memory_space<smem>>
    %cst = arith.constant 1.562500e-02 : f32
    %255 = arith.mulf %254, %cst : f32
    %c1_193 = arith.constant 1 : index
    %256 = memref.load %arg2[%c1_193] : memref<2xf32, #tpu.memory_space<smem>>
    %257 = vector.broadcast %255 : f32 to vector<2x4x4xf32>
    %258 = arith.mulf %252, %257 : vector<2x4x4xf32>
    %259 = vector.broadcast %256 : f32 to vector<2x4x4xf32>
    %260 = arith.mulf %253, %259 : vector<2x4x4xf32>
    %261 = arith.addf %258, %260 : vector<2x4x4xf32>
    %c0_194 = arith.constant 0 : index
    %c0_195 = arith.constant 0 : index
    %c0_196 = arith.constant 0 : index
    %262 = vector.load %arg4[%c0_194, %c0_195, %c0_196] : memref<2x4x4xf32, #tpu.memory_space<vmem>>, vector<2x4x4xf32>
    tpu.vector_store %arg4[%c0_194, %c0_195, %c0_196], %261 {strides = array<i32>} : memref<2x4x4xf32, #tpu.memory_space<vmem>>, vector<2x4x4xf32>,
    return
  }
  func.func @transform_0(%arg0: i32, %arg1: i32, %arg2: memref<2xf32, #tpu.memory_space<smem>>) -> (i32, i32, i32, i32) {
    %c0_i32 = arith.constant 0 : i32
    %c0_i32_0 = arith.constant 0 : i32
    %c0_i32_1 = arith.constant 0 : i32
    return %arg0, %c0_i32, %c0_i32_0, %arg1 : i32, i32, i32, i32
  }
  func.func @transform_1(%arg0: i32, %arg1: i32, %arg2: memref<2xf32, #tpu.memory_space<smem>>) -> (i32, i32, i32) {
    %c0_i32 = arith.constant 0 : i32
    %c0_i32_0 = arith.constant 0 : i32
    return %arg0, %c0_i32, %arg1 : i32, i32, i32
  }
}

</mosaic_0001>

<bundles_post_ra>
// kernel: tpu_custom_call.1
= control target key start
LH: loop header
LB: loop body
LE: loop exit
PB: predicated region body
PF: predicated region fallthrough
CT: control target
= control target key end

     0   :  { %s1082_s0 = inlined_call_operand.vmem [shape: f32[2], index: 0, kind: input, shape index: {}]   ;;  %s1083_s1 = inlined_call_operand.vmem [shape: f32[2,64,4,4], index: 1, kind: input, shape index: {}]   ;;  %s1084_s2 = inlined_call_operand.hbm [shape: f32[2,4,4], index: 2, kind: output, shape index: {}]  }
   0x1   :  { %s7_s11 = sshll.u32 %s1082_s0, 4  ;;  %s8_s11 = int_to_ptr.vmem [resolvable:$true] %s7_s11 }
   0x2   :  { %s620_s12 = scalar_lea.vmem %s8_s11, 16  ;;  %p625_p1 = scmp.lt.s32.totalorder %s8_s11, %s8_s11 }
   0x3   :  { %p621_p0 = scmp.ne.s32.totalorder %s8_s11, %s620_s12  ;;  %p626_p2 = scmp.lt.s32.totalorder %s620_s12, %s620_s12 }
   0x5   :  { %p627_p3 = por %p626_p2, %p625_p1 }
   0x7   :  { %p628_p4 = pnand %p627_p3, %p621_p0 }
   0x9   :  { %631 = shalt.err (!%p628_p4)  }
   0xa   :  { %s658_s13 = smov [#allocation3]  }
   0xb   :  { %10 = dma.vmem_to_smem %s8_s11, 16, %s658_s13, [#allocation2] }
   0xc   :  { %654 = dma.done.wait [#allocation2], 16 }
   0xd   :  { %655 = vsyncadd [#allocation2], 4294967280 }
   0xe   :  { %12 = sfence }
   0xf   :  { %13 = vsyncpa [#allocation5], 0  ;;  %v16_v0 = vld [vmem:[%s1083_s1] sm:$0xf]  ;;  %v489_v2 = vld [vmem:[%s1083_s1 + $0x4] sm:$0xf] }
  0x10   :  { %v17_v1 = vld [vmem:[%s1083_s1 + $0x100] sm:$0xf]  ;;  %v490_v3 = vld [vmem:[%s1083_s1 + $0x104] sm:$0xf]  ;;  %v491_v4 = vld [vmem:[%s1083_s1 + $0x8] sm:$0xf]  ;;  %v21_v5 = vadd.f32 %v489_v2, %v16_v0  ;;  %v23_v7 = vmax.f32 %v16_v0, %v489_v2 }
  0x11   :  { %v22_v6 = vadd.f32 %v490_v3, %v17_v1  ;;  %v24_v8 = vmax.f32 %v17_v1, %v490_v3  ;;  %v492_v9 = vld [vmem:[%s1083_s1 + $0x108] sm:$0xf]  ;;  %v493_v10 = vld [vmem:[%s1083_s1 + $0xc] sm:$0xf]  ;;  %v495_v16 = vld [vmem:[%s1083_s1 + $0x10] sm:$0xf] }
  0x12   :  { %v494_v11 = vld [vmem:[%s1083_s1 + $0x10c] sm:$0xf]  ;;  %v28_v12 = vadd.f32 %v491_v4, %v21_v5  ;;  %v30_v14 = vmax.f32 %v23_v7, %v491_v4  ;;  %v496_v17 = vld [vmem:[%s1083_s1 + $0x110] sm:$0xf]  ;;  %v497_v22 = vld [vmem:[%s1083_s1 + $0x14] sm:$0xf] }
  0x13   :  { %v29_v13 = vadd.f32 %v492_v9, %v22_v6  ;;  %v31_v15 = vmax.f32 %v24_v8, %v492_v9  ;;  %v498_v23 = vld [vmem:[%s1083_s1 + $0x114] sm:$0xf]  ;;  %v499_v28 = vld [vmem:[%s1083_s1 + $0x18] sm:$0xf]  ;;  %v501_v34 = vld [vmem:[%s1083_s1 + $0x1c] sm:$0xf] }
  0x14   :  { %v35_v18 = vadd.f32 %v493_v10, %v28_v12  ;;  %v37_v20 = vmax.f32 %v30_v14, %v493_v10  ;;  %v500_v29 = vld [vmem:[%s1083_s1 + $0x118] sm:$0xf]  ;;  %v502_v35 = vld [vmem:[%s1083_s1 + $0x11c] sm:$0xf]  ;;  %v503_v40 = vld [vmem:[%s1083_s1 + $0x20] sm:$0xf] }
  0x15   :  { %v36_v19 = vadd.f32 %v494_v11, %v29_v13  ;;  %v38_v21 = vmax.f32 %v31_v15, %v494_v11  ;;  %v504_v41 = vld [vmem:[%s1083_s1 + $0x120] sm:$0xf]  ;;  %v505_v46 = vld [vmem:[%s1083_s1 + $0x24] sm:$0xf]  ;;  %v507_v52 = vld [vmem:[%s1083_s1 + $0x28] sm:$0xf] }
  0x16   :  { %v42_v24 = vadd.f32 %v495_v16, %v35_v18  ;;  %v44_v26 = vmax.f32 %v37_v20, %v495_v16  ;;  %v506_v47 = vld [vmem:[%s1083_s1 + $0x124] sm:$0xf]  ;;  %v508_v53 = vld [vmem:[%s1083_s1 + $0x128] sm:$0xf]  ;;  %v509_v58 = vld [vmem:[%s1083_s1 + $0x2c] sm:$0xf] }
  0x17   :  { %v43_v25 = vadd.f32 %v496_v17, %v36_v19  ;;  %v45_v27 = vmax.f32 %v38_v21, %v496_v17  ;;  %v510_v59 = vld [vmem:[%s1083_s1 + $0x12c] sm:$0xf]  ;;  %v511_v0 = vld [vmem:[%s1083_s1 + $0x30] sm:$0xf]  ;;  %v513_v6 = vld [vmem:[%s1083_s1 + $0x34] sm:$0xf] }
  0x18   :  { %v49_v30 = vadd.f32 %v497_v22, %v42_v24  ;;  %v51_v32 = vmax.f32 %v44_v26, %v497_v22  ;;  %v512_v1 = vld [vmem:[%s1083_s1 + $0x130] sm:$0xf]  ;;  %v514_v7 = vld [vmem:[%s1083_s1 + $0x134] sm:$0xf]  ;;  %v515_v12 = vld [vmem:[%s1083_s1 + $0x38] sm:$0xf] }
  0x19   :  { %v50_v31 = vadd.f32 %v498_v23, %v43_v25  ;;  %v52_v33 = vmax.f32 %v45_v27, %v498_v23  ;;  %v516_v13 = vld [vmem:[%s1083_s1 + $0x138] sm:$0xf]  ;;  %v517_v18 = vld [vmem:[%s1083_s1 + $0x3c] sm:$0xf]  ;;  %v519_v24 = vld [vmem:[%s1083_s1 + $0x40] sm:$0xf] }
  0x1a   :  { %v56_v36 = vadd.f32 %v499_v28, %v49_v30  ;;  %v58_v38 = vmax.f32 %v51_v32, %v499_v28  ;;  %v518_v19 = vld [vmem:[%s1083_s1 + $0x13c] sm:$0xf]  ;;  %v520_v25 = vld [vmem:[%s1083_s1 + $0x140] sm:$0xf]  ;;  %v521_v30 = vld [vmem:[%s1083_s1 + $0x44] sm:$0xf] }
  0x1b   :  { %v57_v37 = vadd.f32 %v500_v29, %v50_v31  ;;  %v59_v39 = vmax.f32 %v52_v33, %v500_v29  ;;  %v522_v31 = vld [vmem:[%s1083_s1 + $0x144] sm:$0xf]  ;;  %s1034_s17 = sld [smem:[#allocation3]]  ;;  %s1048_s26 = sld [smem:[#allocation3 + $0x1]]  ;;  %vm470_vm0 = vcmask 27648  }
  0x1c   :  { %v63_v42 = vadd.f32 %v501_v34, %v56_v36  ;;  %v65_v44 = vmax.f32 %v58_v38, %v501_v34  ;;  %v523_v36 = vld [vmem:[%s1083_s1 + $0x48] sm:$0xf]  ;;  %s659_s12 = smov [#allocation4]  }
  0x1d   :  { %v64_v43 = vadd.f32 %v502_v35, %v57_v37  ;;  %v66_v45 = vmax.f32 %v59_v39, %v502_v35  ;;  %v524_v37 = vld [vmem:[%s1083_s1 + $0x148] sm:$0xf]  ;;  %s478_s13 = sshll.u32 %s659_s12, 4  ;;  %s479_s13 = int_to_ptr.vmem [resolvable:$true] %s478_s13 }
  0x1e   :  { %v70_v48 = vadd.f32 %v503_v40, %v63_v42  ;;  %v72_v50 = vmax.f32 %v65_v44, %v503_v40  ;;  %v525_v42 = vld [vmem:[%s1083_s1 + $0x4c] sm:$0xf]  ;;  %p637_p6 = scmp.lt.s32.totalorder %s479_s13, %s479_s13 }
  0x1f   :  { %v71_v49 = vadd.f32 %v504_v41, %v64_v43  ;;  %v73_v51 = vmax.f32 %v66_v45, %v504_v41  ;;  %v526_v43 = vld [vmem:[%s1083_s1 + $0x14c] sm:$0xf] }
  0x20   :  { %v77_v54 = vadd.f32 %v505_v46, %v70_v48  ;;  %v79_v56 = vmax.f32 %v72_v50, %v505_v46  ;;  %v527_v48 = vld [vmem:[%s1083_s1 + $0x50] sm:$0xf] }
  0x21   :  { %v78_v55 = vadd.f32 %v506_v47, %v71_v49  ;;  %v80_v57 = vmax.f32 %v73_v51, %v506_v47  ;;  %v528_v49 = vld [vmem:[%s1083_s1 + $0x150] sm:$0xf]  ;;  %s460_s7 = smul.f32 0.015625, %s1034_s17 }
  0x22   :  { %v84_v60 = vadd.f32 %v507_v52, %v77_v54  ;;  %v86_v62 = vmax.f32 %v79_v56, %v507_v52  ;;  %v529_v54 = vld [vmem:[%s1083_s1 + $0x54] sm:$0xf] }
  0x23   :  { %v85_v61 = vadd.f32 %v508_v53, %v78_v55  ;;  %v87_v63 = vmax.f32 %v80_v57, %v508_v53  ;;  %v530_v55 = vld [vmem:[%s1083_s1 + $0x154] sm:$0xf] }
  0x24   :  { %v91_v2 = vadd.f32 %v509_v58, %v84_v60  ;;  %v93_v4 = vmax.f32 %v86_v62, %v509_v58  ;;  %v531_v60 = vld [vmem:[%s1083_s1 + $0x58] sm:$0xf] }
  0x25   :  { %v92_v3 = vadd.f32 %v510_v59, %v85_v61  ;;  %v94_v5 = vmax.f32 %v87_v63, %v510_v59  ;;  %v532_v61 = vld [vmem:[%s1083_s1 + $0x158] sm:$0xf] }
  0x26   :  { %v98_v8 = vadd.f32 %v511_v0, %v91_v2  ;;  %v100_v10 = vmax.f32 %v93_v4, %v511_v0  ;;  %v533_v2 = vld [vmem:[%s1083_s1 + $0x5c] sm:$0xf] }
  0x27   :  { %v99_v9 = vadd.f32 %v512_v1, %v92_v3  ;;  %v101_v11 = vmax.f32 %v94_v5, %v512_v1  ;;  %v534_v3 = vld [vmem:[%s1083_s1 + $0x15c] sm:$0xf] }
  0x28   :  { %v105_v14 = vadd.f32 %v513_v6, %v98_v8  ;;  %v107_v16 = vmax.f32 %v100_v10, %v513_v6  ;;  %v535_v8 = vld [vmem:[%s1083_s1 + $0x60] sm:$0xf] }
  0x29   :  { %v106_v15 = vadd.f32 %v514_v7, %v99_v9  ;;  %v108_v17 = vmax.f32 %v101_v11, %v514_v7  ;;  %v536_v9 = vld [vmem:[%s1083_s1 + $0x160] sm:$0xf] }
  0x2a   :  { %v112_v20 = vadd.f32 %v515_v12, %v105_v14  ;;  %v114_v22 = vmax.f32 %v107_v16, %v515_v12  ;;  %v537_v14 = vld [vmem:[%s1083_s1 + $0x64] sm:$0xf] }
  0x2b   :  { %v113_v21 = vadd.f32 %v516_v13, %v106_v15  ;;  %v115_v23 = vmax.f32 %v108_v17, %v516_v13  ;;  %v538_v15 = vld [vmem:[%s1083_s1 + $0x164] sm:$0xf] }
  0x2c   :  { %v119_v26 = vadd.f32 %v517_v18, %v112_v20  ;;  %v121_v28 = vmax.f32 %v114_v22, %v517_v18  ;;  %v539_v20 = vld [vmem:[%s1083_s1 + $0x68] sm:$0xf] }
  0x2d   :  { %v120_v27 = vadd.f32 %v518_v19, %v113_v21  ;;  %v122_v29 = vmax.f32 %v115_v23, %v518_v19  ;;  %v540_v21 = vld [vmem:[%s1083_s1 + $0x168] sm:$0xf] }
  0x2e   :  { %v126_v32 = vadd.f32 %v519_v24, %v119_v26  ;;  %v128_v34 = vmax.f32 %v121_v28, %v519_v24  ;;  %v541_v26 = vld [vmem:[%s1083_s1 + $0x6c] sm:$0xf] }
  0x2f   :  { %v127_v33 = vadd.f32 %v520_v25, %v120_v27  ;;  %v129_v35 = vmax.f32 %v122_v29, %v520_v25  ;;  %v542_v27 = vld [vmem:[%s1083_s1 + $0x16c] sm:$0xf] }
  0x30   :  { %v133_v38 = vadd.f32 %v521_v30, %v126_v32  ;;  %v135_v40 = vmax.f32 %v128_v34, %v521_v30  ;;  %v543_v32 = vld [vmem:[%s1083_s1 + $0x70] sm:$0xf] }
  0x31   :  { %v134_v39 = vadd.f32 %v522_v31, %v127_v33  ;;  %v136_v41 = vmax.f32 %v129_v35, %v522_v31  ;;  %v544_v33 = vld [vmem:[%s1083_s1 + $0x170] sm:$0xf] }
  0x32   :  { %v140_v44 = vadd.f32 %v523_v36, %v133_v38  ;;  %v142_v46 = vmax.f32 %v135_v40, %v523_v36  ;;  %v545_v38 = vld [vmem:[%s1083_s1 + $0x74] sm:$0xf] }
  0x33   :  { %v141_v45 = vadd.f32 %v524_v37, %v134_v39  ;;  %v143_v47 = vmax.f32 %v136_v41, %v524_v37  ;;  %v546_v39 = vld [vmem:[%s1083_s1 + $0x174] sm:$0xf] }
  0x34   :  { %v147_v50 = vadd.f32 %v525_v42, %v140_v44  ;;  %v149_v52 = vmax.f32 %v142_v46, %v525_v42  ;;  %v547_v44 = vld [vmem:[%s1083_s1 + $0x78] sm:$0xf] }
  0x35   :  { %v148_v51 = vadd.f32 %v526_v43, %v141_v45  ;;  %v150_v53 = vmax.f32 %v143_v47, %v526_v43  ;;  %v548_v45 = vld [vmem:[%s1083_s1 + $0x178] sm:$0xf] }
  0x36   :  { %v154_v56 = vadd.f32 %v527_v48, %v147_v50  ;;  %v156_v58 = vmax.f32 %v149_v52, %v527_v48  ;;  %v549_v50 = vld [vmem:[%s1083_s1 + $0x7c] sm:$0xf] }
  0x37   :  { %v155_v57 = vadd.f32 %v528_v49, %v148_v51  ;;  %v157_v59 = vmax.f32 %v150_v53, %v528_v49  ;;  %v550_v51 = vld [vmem:[%s1083_s1 + $0x17c] sm:$0xf] }
  0x38   :  { %v161_v62 = vadd.f32 %v529_v54, %v154_v56  ;;  %v163_v0 = vmax.f32 %v156_v58, %v529_v54  ;;  %v551_v56 = vld [vmem:[%s1083_s1 + $0x80] sm:$0xf] }
  0x39   :  { %v162_v63 = vadd.f32 %v530_v55, %v155_v57  ;;  %v164_v1 = vmax.f32 %v157_v59, %v530_v55  ;;  %v552_v57 = vld [vmem:[%s1083_s1 + $0x180] sm:$0xf] }
  0x3a   :  { %v168_v4 = vadd.f32 %v531_v60, %v161_v62  ;;  %v170_v6 = vmax.f32 %v163_v0, %v531_v60  ;;  %v553_v62 = vld [vmem:[%s1083_s1 + $0x84] sm:$0xf] }
  0x3b   :  { %v169_v5 = vadd.f32 %v532_v61, %v162_v63  ;;  %v171_v7 = vmax.f32 %v164_v1, %v532_v61  ;;  %v554_v63 = vld [vmem:[%s1083_s1 + $0x184] sm:$0xf] }
  0x3c   :  { %v175_v10 = vadd.f32 %v533_v2, %v168_v4  ;;  %v177_v12 = vmax.f32 %v170_v6, %v533_v2  ;;  %v555_v4 = vld [vmem:[%s1083_s1 + $0x88] sm:$0xf] }
  0x3d   :  { %v176_v11 = vadd.f32 %v534_v3, %v169_v5  ;;  %v178_v13 = vmax.f32 %v171_v7, %v534_v3  ;;  %v556_v5 = vld [vmem:[%s1083_s1 + $0x188] sm:$0xf] }
  0x3e   :  { %v182_v16 = vadd.f32 %v535_v8, %v175_v10  ;;  %v184_v18 = vmax.f32 %v177_v12, %v535_v8  ;;  %v557_v10 = vld [vmem:[%s1083_s1 + $0x8c] sm:$0xf] }
  0x3f   :  { %v183_v17 = vadd.f32 %v536_v9, %v176_v11  ;;  %v185_v19 = vmax.f32 %v178_v13, %v536_v9  ;;  %v558_v11 = vld [vmem:[%s1083_s1 + $0x18c] sm:$0xf] }
  0x40   :  { %v189_v22 = vadd.f32 %v537_v14, %v182_v16  ;;  %v191_v24 = vmax.f32 %v184_v18, %v537_v14  ;;  %v559_v16 = vld [vmem:[%s1083_s1 + $0x90] sm:$0xf] }
  0x41   :  { %v190_v23 = vadd.f32 %v538_v15, %v183_v17  ;;  %v192_v25 = vmax.f32 %v185_v19, %v538_v15  ;;  %v560_v17 = vld [vmem:[%s1083_s1 + $0x190] sm:$0xf] }
  0x42   :  { %v196_v28 = vadd.f32 %v539_v20, %v189_v22  ;;  %v198_v30 = vmax.f32 %v191_v24, %v539_v20  ;;  %v561_v22 = vld [vmem:[%s1083_s1 + $0x94] sm:$0xf] }
  0x43   :  { %v197_v29 = vadd.f32 %v540_v21, %v190_v23  ;;  %v199_v31 = vmax.f32 %v192_v25, %v540_v21  ;;  %v562_v23 = vld [vmem:[%s1083_s1 + $0x194] sm:$0xf] }
  0x44   :  { %v203_v34 = vadd.f32 %v541_v26, %v196_v28  ;;  %v205_v36 = vmax.f32 %v198_v30, %v541_v26  ;;  %v563_v28 = vld [vmem:[%s1083_s1 + $0x98] sm:$0xf] }
  0x45   :  { %v204_v35 = vadd.f32 %v542_v27, %v197_v29  ;;  %v206_v37 = vmax.f32 %v199_v31, %v542_v27  ;;  %v564_v29 = vld [vmem:[%s1083_s1 + $0x198] sm:$0xf] }
  0x46   :  { %v210_v40 = vadd.f32 %v543_v32, %v203_v34  ;;  %v212_v42 = vmax.f32 %v205_v36, %v543_v32  ;;  %v565_v34 = vld [vmem:[%s1083_s1 + $0x9c] sm:$0xf] }
  0x47   :  { %v211_v41 = vadd.f32 %v544_v33, %v204_v35  ;;  %v213_v43 = vmax.f32 %v206_v37, %v544_v33  ;;  %v566_v35 = vld [vmem:[%s1083_s1 + $0x19c] sm:$0xf] }
  0x48   :  { %v217_v46 = vadd.f32 %v545_v38, %v210_v40  ;;  %v219_v48 = vmax.f32 %v212_v42, %v545_v38  ;;  %v567_v40 = vld [vmem:[%s1083_s1 + $0xa0] sm:$0xf] }
  0x49   :  { %v218_v47 = vadd.f32 %v546_v39, %v211_v41  ;;  %v220_v49 = vmax.f32 %v213_v43, %v546_v39  ;;  %v568_v41 = vld [vmem:[%s1083_s1 + $0x1a0] sm:$0xf] }
  0x4a   :  { %v224_v52 = vadd.f32 %v547_v44, %v217_v46  ;;  %v226_v54 = vmax.f32 %v219_v48, %v547_v44  ;;  %v569_v46 = vld [vmem:[%s1083_s1 + $0xa4] sm:$0xf] }
  0x4b   :  { %v225_v53 = vadd.f32 %v548_v45, %v218_v47  ;;  %v227_v55 = vmax.f32 %v220_v49, %v548_v45  ;;  %v570_v47 = vld [vmem:[%s1083_s1 + $0x1a4] sm:$0xf] }
  0x4c   :  { %v231_v58 = vadd.f32 %v549_v50, %v224_v52  ;;  %v233_v60 = vmax.f32 %v226_v54, %v549_v50  ;;  %v571_v52 = vld [vmem:[%s1083_s1 + $0xa8] sm:$0xf] }
  0x4d   :  { %v232_v59 = vadd.f32 %v550_v51, %v225_v53  ;;  %v234_v61 = vmax.f32 %v227_v55, %v550_v51  ;;  %v572_v53 = vld [vmem:[%s1083_s1 + $0x1a8] sm:$0xf] }
  0x4e   :  { %v238_v0 = vadd.f32 %v551_v56, %v231_v58  ;;  %v240_v2 = vmax.f32 %v233_v60, %v551_v56  ;;  %v573_v58 = vld [vmem:[%s1083_s1 + $0xac] sm:$0xf] }
  0x4f   :  { %v239_v1 = vadd.f32 %v552_v57, %v232_v59  ;;  %v241_v3 = vmax.f32 %v234_v61, %v552_v57  ;;  %v574_v59 = vld [vmem:[%s1083_s1 + $0x1ac] sm:$0xf] }
  0x50   :  { %v245_v6 = vadd.f32 %v553_v62, %v238_v0  ;;  %v247_v8 = vmax.f32 %v240_v2, %v553_v62  ;;  %v575_v0 = vld [vmem:[%s1083_s1 + $0xb0] sm:$0xf] }
  0x51   :  { %v246_v7 = vadd.f32 %v554_v63, %v239_v1  ;;  %v248_v9 = vmax.f32 %v241_v3, %v554_v63  ;;  %v576_v1 = vld [vmem:[%s1083_s1 + $0x1b0] sm:$0xf] }
  0x52   :  { %v252_v12 = vadd.f32 %v555_v4, %v245_v6  ;;  %v254_v14 = vmax.f32 %v247_v8, %v555_v4  ;;  %v577_v6 = vld [vmem:[%s1083_s1 + $0xb4] sm:$0xf] }
  0x53   :  { %v253_v13 = vadd.f32 %v556_v5, %v246_v7  ;;  %v255_v15 = vmax.f32 %v248_v9, %v556_v5  ;;  %v578_v7 = vld [vmem:[%s1083_s1 + $0x1b4] sm:$0xf] }
  0x54   :  { %v259_v18 = vadd.f32 %v557_v10, %v252_v12  ;;  %v261_v20 = vmax.f32 %v254_v14, %v557_v10  ;;  %v579_v12 = vld [vmem:[%s1083_s1 + $0xb8] sm:$0xf] }
  0x55   :  { %v260_v19 = vadd.f32 %v558_v11, %v253_v13  ;;  %v262_v21 = vmax.f32 %v255_v15, %v558_v11  ;;  %v580_v13 = vld [vmem:[%s1083_s1 + $0x1b8] sm:$0xf] }
  0x56   :  { %v266_v24 = vadd.f32 %v559_v16, %v259_v18  ;;  %v268_v26 = vmax.f32 %v261_v20, %v559_v16  ;;  %v581_v18 = vld [vmem:[%s1083_s1 + $0xbc] sm:$0xf] }
  0x57   :  { %v267_v25 = vadd.f32 %v560_v17, %v260_v19  ;;  %v269_v27 = vmax.f32 %v262_v21, %v560_v17  ;;  %v582_v19 = vld [vmem:[%s1083_s1 + $0x1bc] sm:$0xf] }
  0x58   :  { %v273_v30 = vadd.f32 %v561_v22, %v266_v24  ;;  %v275_v32 = vmax.f32 %v268_v26, %v561_v22  ;;  %v583_v24 = vld [vmem:[%s1083_s1 + $0xc0] sm:$0xf] }
  0x59   :  { %v274_v31 = vadd.f32 %v562_v23, %v267_v25  ;;  %v276_v33 = vmax.f32 %v269_v27, %v562_v23  ;;  %v584_v25 = vld [vmem:[%s1083_s1 + $0x1c0] sm:$0xf] }
  0x5a   :  { %v280_v36 = vadd.f32 %v563_v28, %v273_v30  ;;  %v282_v38 = vmax.f32 %v275_v32, %v563_v28  ;;  %v585_v30 = vld [vmem:[%s1083_s1 + $0xc4] sm:$0xf] }
  0x5b   :  { %v281_v37 = vadd.f32 %v564_v29, %v274_v31  ;;  %v283_v39 = vmax.f32 %v276_v33, %v564_v29  ;;  %v586_v31 = vld [vmem:[%s1083_s1 + $0x1c4] sm:$0xf] }
  0x5c   :  { %v287_v42 = vadd.f32 %v565_v34, %v280_v36  ;;  %v289_v44 = vmax.f32 %v282_v38, %v565_v34  ;;  %v587_v36 = vld [vmem:[%s1083_s1 + $0xc8] sm:$0xf] }
  0x5d   :  { %v288_v43 = vadd.f32 %v566_v35, %v281_v37  ;;  %v290_v45 = vmax.f32 %v283_v39, %v566_v35  ;;  %v588_v37 = vld [vmem:[%s1083_s1 + $0x1c8] sm:$0xf] }
  0x5e   :  { %v294_v48 = vadd.f32 %v567_v40, %v287_v42  ;;  %v296_v50 = vmax.f32 %v289_v44, %v567_v40  ;;  %v589_v42 = vld [vmem:[%s1083_s1 + $0xcc] sm:$0xf] }
  0x5f   :  { %v295_v49 = vadd.f32 %v568_v41, %v288_v43  ;;  %v297_v51 = vmax.f32 %v290_v45, %v568_v41  ;;  %v590_v43 = vld [vmem:[%s1083_s1 + $0x1cc] sm:$0xf] }
  0x60   :  { %v301_v54 = vadd.f32 %v569_v46, %v294_v48  ;;  %v303_v56 = vmax.f32 %v296_v50, %v569_v46  ;;  %v591_v48 = vld [vmem:[%s1083_s1 + $0xd0] sm:$0xf] }
  0x61   :  { %v302_v55 = vadd.f32 %v570_v47, %v295_v49  ;;  %v304_v57 = vmax.f32 %v297_v51, %v570_v47  ;;  %v592_v49 = vld [vmem:[%s1083_s1 + $0x1d0] sm:$0xf] }
  0x62   :  { %v308_v60 = vadd.f32 %v571_v52, %v301_v54  ;;  %v310_v62 = vmax.f32 %v303_v56, %v571_v52  ;;  %v593_v54 = vld [vmem:[%s1083_s1 + $0xd4] sm:$0xf] }
  0x63   :  { %v309_v61 = vadd.f32 %v572_v53, %v302_v55  ;;  %v311_v63 = vmax.f32 %v304_v57, %v572_v53  ;;  %v594_v55 = vld [vmem:[%s1083_s1 + $0x1d4] sm:$0xf] }
  0x64   :  { %v315_v2 = vadd.f32 %v573_v58, %v308_v60  ;;  %v317_v4 = vmax.f32 %v310_v62, %v573_v58  ;;  %v595_v60 = vld [vmem:[%s1083_s1 + $0xd8] sm:$0xf] }
  0x65   :  { %v316_v3 = vadd.f32 %v574_v59, %v309_v61  ;;  %v318_v5 = vmax.f32 %v311_v63, %v574_v59  ;;  %v596_v61 = vld [vmem:[%s1083_s1 + $0x1d8] sm:$0xf] }
  0x66   :  { %v322_v8 = vadd.f32 %v575_v0, %v315_v2  ;;  %v324_v10 = vmax.f32 %v317_v4, %v575_v0  ;;  %v597_v2 = vld [vmem:[%s1083_s1 + $0xdc] sm:$0xf] }
  0x67   :  { %v323_v9 = vadd.f32 %v576_v1, %v316_v3  ;;  %v325_v11 = vmax.f32 %v318_v5, %v576_v1  ;;  %v598_v3 = vld [vmem:[%s1083_s1 + $0x1dc] sm:$0xf] }
  0x68   :  { %v329_v14 = vadd.f32 %v577_v6, %v322_v8  ;;  %v331_v16 = vmax.f32 %v324_v10, %v577_v6  ;;  %v599_v8 = vld [vmem:[%s1083_s1 + $0xe0] sm:$0xf] }
  0x69   :  { %v330_v15 = vadd.f32 %v578_v7, %v323_v9  ;;  %v332_v17 = vmax.f32 %v325_v11, %v578_v7  ;;  %v600_v9 = vld [vmem:[%s1083_s1 + $0x1e0] sm:$0xf] }
  0x6a   :  { %v336_v20 = vadd.f32 %v579_v12, %v329_v14  ;;  %v338_v22 = vmax.f32 %v331_v16, %v579_v12  ;;  %v601_v14 = vld [vmem:[%s1083_s1 + $0xe4] sm:$0xf] }
  0x6b   :  { %v337_v21 = vadd.f32 %v580_v13, %v330_v15  ;;  %v339_v23 = vmax.f32 %v332_v17, %v580_v13  ;;  %v602_v15 = vld [vmem:[%s1083_s1 + $0x1e4] sm:$0xf] }
  0x6c   :  { %v343_v26 = vadd.f32 %v581_v18, %v336_v20  ;;  %v345_v28 = vmax.f32 %v338_v22, %v581_v18  ;;  %v603_v20 = vld [vmem:[%s1083_s1 + $0xe8] sm:$0xf] }
  0x6d   :  { %v344_v27 = vadd.f32 %v582_v19, %v337_v21  ;;  %v346_v29 = vmax.f32 %v339_v23, %v582_v19  ;;  %v604_v21 = vld [vmem:[%s1083_s1 + $0x1e8] sm:$0xf] }
  0x6e   :  { %v350_v32 = vadd.f32 %v583_v24, %v343_v26  ;;  %v352_v34 = vmax.f32 %v345_v28, %v583_v24  ;;  %v605_v26 = vld [vmem:[%s1083_s1 + $0xec] sm:$0xf] }
  0x6f   :  { %v351_v33 = vadd.f32 %v584_v25, %v344_v27  ;;  %v353_v35 = vmax.f32 %v346_v29, %v584_v25  ;;  %v606_v27 = vld [vmem:[%s1083_s1 + $0x1ec] sm:$0xf] }
  0x70   :  { %v357_v38 = vadd.f32 %v585_v30, %v350_v32  ;;  %v359_v40 = vmax.f32 %v352_v34, %v585_v30  ;;  %v607_v32 = vld [vmem:[%s1083_s1 + $0xf0] sm:$0xf] }
  0x71   :  { %v358_v39 = vadd.f32 %v586_v31, %v351_v33  ;;  %v360_v41 = vmax.f32 %v353_v35, %v586_v31  ;;  %v608_v33 = vld [vmem:[%s1083_s1 + $0x1f0] sm:$0xf] }
  0x72   :  { %v364_v44 = vadd.f32 %v587_v36, %v357_v38  ;;  %v366_v46 = vmax.f32 %v359_v40, %v587_v36  ;;  %v609_v38 = vld [vmem:[%s1083_s1 + $0xf4] sm:$0xf] }
  0x73   :  { %v365_v45 = vadd.f32 %v588_v37, %v358_v39  ;;  %v367_v47 = vmax.f32 %v360_v41, %v588_v37  ;;  %v610_v39 = vld [vmem:[%s1083_s1 + $0x1f4] sm:$0xf] }
  0x74   :  { %v371_v50 = vadd.f32 %v589_v42, %v364_v44  ;;  %v373_v52 = vmax.f32 %v366_v46, %v589_v42  ;;  %v611_v44 = vld [vmem:[%s1083_s1 + $0xf8] sm:$0xf] }
  0x75   :  { %v372_v51 = vadd.f32 %v590_v43, %v365_v45  ;;  %v374_v53 = vmax.f32 %v367_v47, %v590_v43  ;;  %v612_v45 = vld [vmem:[%s1083_s1 + $0x1f8] sm:$0xf] }
  0x76   :  { %v378_v56 = vadd.f32 %v591_v48, %v371_v50  ;;  %v380_v58 = vmax.f32 %v373_v52, %v591_v48  ;;  %v613_v50 = vld [vmem:[%s1083_s1 + $0xfc] sm:$0xf] }
  0x77   :  { %v379_v57 = vadd.f32 %v592_v49, %v372_v51  ;;  %v381_v59 = vmax.f32 %v374_v53, %v592_v49  ;;  %v614_v51 = vld [vmem:[%s1083_s1 + $0x1fc] sm:$0xf]  ;;  %s632_s1 = scalar_lea.vmem %s479_s13, 128 }
  0x78   :  { %v385_v62 = vadd.f32 %v593_v54, %v378_v56  ;;  %v387_v0 = vmax.f32 %v380_v58, %v593_v54  ;;  %v462_v56 = vstv %s460_s7  ;;  %p633_p5 = scmp.ne.s32.totalorder %s479_s13, %s632_s1  ;;  %p638_p7 = scmp.lt.s32.totalorder %s632_s1, %s632_s1 }
  0x79   :  { %v386_v63 = vadd.f32 %v594_v55, %v379_v57  ;;  %v388_v1 = vmax.f32 %v381_v59, %v594_v55  ;;  %v465_v57 = vstv %s1048_s26 }
  0x7a   :  { %v392_v4 = vadd.f32 %v595_v60, %v385_v62  ;;  %v394_v6 = vmax.f32 %v387_v0, %v595_v60  ;;  %p639_p8 = por %p638_p7, %p637_p6 }
  0x7b   :  { %v393_v5 = vadd.f32 %v596_v61, %v386_v63  ;;  %v395_v7 = vmax.f32 %v388_v1, %v596_v61 }
  0x7c   :  { %v399_v10 = vadd.f32 %v597_v2, %v392_v4  ;;  %v401_v12 = vmax.f32 %v394_v6, %v597_v2  ;;  %p640_p9 = pnand %p639_p8, %p633_p5 }
  0x7d   :  { %v400_v11 = vadd.f32 %v598_v3, %v393_v5  ;;  %v402_v13 = vmax.f32 %v395_v7, %v598_v3 }
  0x7e   :  { %v406_v16 = vadd.f32 %v599_v8, %v399_v10  ;;  %v408_v18 = vmax.f32 %v401_v12, %v599_v8 }
  0x7f   :  { %v407_v17 = vadd.f32 %v600_v9, %v400_v11  ;;  %v409_v19 = vmax.f32 %v402_v13, %v600_v9 }
  0x80   :  { %v413_v22 = vadd.f32 %v601_v14, %v406_v16  ;;  %v415_v24 = vmax.f32 %v408_v18, %v601_v14 }
  0x81   :  { %v414_v23 = vadd.f32 %v602_v15, %v407_v17  ;;  %v416_v25 = vmax.f32 %v409_v19, %v602_v15 }
  0x82   :  { %v420_v28 = vadd.f32 %v603_v20, %v413_v22  ;;  %v422_v30 = vmax.f32 %v415_v24, %v603_v20 }
  0x83   :  { %v421_v29 = vadd.f32 %v604_v21, %v414_v23  ;;  %v423_v31 = vmax.f32 %v416_v25, %v604_v21 }
  0x84   :  { %v427_v34 = vadd.f32 %v605_v26, %v420_v28  ;;  %v429_v36 = vmax.f32 %v422_v30, %v605_v26 }
  0x85   :  { %v428_v35 = vadd.f32 %v606_v27, %v421_v29  ;;  %v430_v37 = vmax.f32 %v423_v31, %v606_v27 }
  0x86   :  { %v434_v40 = vadd.f32 %v607_v32, %v427_v34  ;;  %v436_v42 = vmax.f32 %v429_v36, %v607_v32 }
  0x87   :  { %v435_v41 = vadd.f32 %v608_v33, %v428_v35  ;;  %v437_v43 = vmax.f32 %v430_v37, %v608_v33 }
  0x88   :  { %v441_v46 = vadd.f32 %v609_v38, %v434_v40  ;;  %v443_v48 = vmax.f32 %v436_v42, %v609_v38 }
  0x89   :  { %v442_v47 = vadd.f32 %v610_v39, %v435_v41  ;;  %v444_v49 = vmax.f32 %v437_v43, %v610_v39 }
  0x8a   :  { %v448_v52 = vadd.f32 %v611_v44, %v441_v46  ;;  %v450_v54 = vmax.f32 %v443_v48, %v611_v44 }
  0x8b   :  { %v449_v53 = vadd.f32 %v612_v45, %v442_v47  ;;  %v451_v55 = vmax.f32 %v444_v49, %v612_v45 }
  0x8c   :  { %v455_v58 = vadd.f32 %v613_v50, %v448_v52  ;;  %v457_v60 = vmax.f32 %v450_v54, %v613_v50 }
  0x8d   :  { %v456_v59 = vadd.f32 %v614_v51, %v449_v53  ;;  %v458_v61 = vmax.f32 %v451_v55, %v614_v51 }
  0x8e   :  { %v463_v62 = vmul.f32 %v462_v56, %v455_v58  ;;  %v466_v0 = vmul.f32 %v465_v57, %v457_v60 }
  0x8f   :  { %v464_v63 = vmul.f32 %v462_v56, %v456_v59  ;;  %v467_v1 = vmul.f32 %v465_v57, %v458_v61 }
  0x90   :  { %v468_v2 = vadd.f32 %v466_v0, %v463_v62 }
  0x91   :  { %v469_v3 = vadd.f32 %v467_v1, %v464_v63 }
  0x92   :  { %471 = vst.msk [vmem:[#allocation4] sm:$0xf] %vm470_vm0, %v468_v2 }
  0x93   :  { %472 = vst.msk [vmem:[#allocation4 + $0x4] sm:$0xf] %vm470_vm0, %v469_v3 }
  0x94   :  { %643 = shalt.err (!%p640_p9)
}
  0x95   :  { %s644_s16 = scalar_lea.hbm %s1084_s2, 128 }
  0x96   :  { %p645_p10 = scmp.ne.s32.totalorder %s1084_s2, %s644_s16  ;;  %p648_p11 = scmp.lt.u32.totalorder %s644_s16, %s1084_s2 }
  0x98   :  { %p650_p12 = pnand %p648_p11, %p645_p10 }
  0x9a   :  { %653 = shalt.err (!%p650_p12)
}
  0x9b   :  { %s660_s20 = smov 64   ;;  %s661_s21 = smov 4  }
  0x9c   :  { %484 = dma.vmem_to_hbm [thread:$0]  %s479_s13, 128, %s1084_s2, [#allocation5], %s660_s20, %s660_s20, %s661_s21  }
  0x9d   :  { %656 = dma.done.wait [#allocation5], 128  }
  0x9e   :  { %657 = vsyncadd [#allocation5], 4294967168 }
  0x9f   :  { %488 = vsyncpa [#allocation5], 1 }

</bundles_post_ra>
